<compile_context>
chip_gen: v6e
topology: v6e:2x2x1
jax: 0.10.0
libtpu: 0.0.40
codegen_flags: <defaults>
</compile_context>

<pallas_src>
import jax
import jax.numpy as jnp
import numpy as np
from jax.experimental import pallas as pl
from jax.experimental.pallas import tpu as pltpu

PAD = 0  # Constants.PAD


def _round_up(x, m):
    return ((x + m - 1) // m) * m


# ----------------------------- Pallas kernels -----------------------------

def encoder_kernel(x_ref, wih_ref, whh_ref, b_ref, ctx_ref, hn_ref, cn_ref, xp_sc):
    """One LSTM direction per grid step (grid=(2,), 'parallel').

    x_ref   : (S*Bp, E) time-major flattened embeddings (shared by both dirs)
    wih_ref : (E, 4H), whh_ref: (H, 4H), b_ref: (1, 4H) for this direction
    ctx_ref : (S, Bp, H) per-direction output slab (direction dim squeezed)
    hn/cn   : (Bp, H) final states for this direction
    """
    d = pl.program_id(0)
    S, Bp, H = ctx_ref.shape

    # Hoisted input projection: one wide matmul for every time step.
    xp_sc[...] = (jnp.dot(x_ref[...], wih_ref[...],
                          preferred_element_type=jnp.float32) + b_ref[...])
    whh = whh_ref[...]

    def step(t, carry):
        h, c = carry
        pos = jnp.where(d == 0, t, S - 1 - t)          # fwd: t, bwd: S-1-t
        row = pl.multiple_of(pos * Bp, Bp)
        pre = xp_sc[pl.ds(row, Bp), :] + jnp.dot(h, whh,
                                                 preferred_element_type=jnp.float32)
        i_g = jax.nn.sigmoid(pre[:, 0:H])
        f_g = jax.nn.sigmoid(pre[:, H:2 * H])
        g_g = jnp.tanh(pre[:, 2 * H:3 * H])
        o_g = jax.nn.sigmoid(pre[:, 3 * H:4 * H])
        c2 = f_g * c + i_g * g_g
        h2 = o_g * jnp.tanh(c2)
        ctx_ref[pos] = h2                               # dynamic first-axis store
        return (h2, c2)

    h, c = jax.lax.fori_loop(
        0, S, step,
        (jnp.zeros((Bp, H), jnp.float32), jnp.zeros((Bp, H), jnp.float32)))
    hn_ref[...] = h
    cn_ref[...] = c


def run_encoder(x2d, wih, whh, b, S, Bp):
    E = x2d.shape[-1]
    H = whh.shape[1]
    return pl.pallas_call(
        encoder_kernel,
        out_shape=(jax.ShapeDtypeStruct((2, S, Bp, H), jnp.float32),
                   jax.ShapeDtypeStruct((2, Bp, H), jnp.float32),
                   jax.ShapeDtypeStruct((2, Bp, H), jnp.float32)),
        grid=(2,),
        in_specs=[pl.BlockSpec((S * Bp, E), lambda d: (0, 0)),
                  pl.BlockSpec((None, E, 4 * H), lambda d: (d, 0, 0)),
                  pl.BlockSpec((None, H, 4 * H), lambda d: (d, 0, 0)),
                  pl.BlockSpec((None, 1, 4 * H), lambda d: (d, 0, 0))],
        out_specs=(pl.BlockSpec((None, S, Bp, H), lambda d: (d, 0, 0, 0)),
                   pl.BlockSpec((None, Bp, H), lambda d: (d, 0, 0)),
                   pl.BlockSpec((None, Bp, H), lambda d: (d, 0, 0))),
        scratch_shapes=[pltpu.VMEM((S * Bp, 4 * H), jnp.float32)],
        compiler_params=pltpu.CompilerParams(dimension_semantics=("parallel",)),
    )(x2d, wih, whh, b)


def decoder_kernel(y2d_ref, hcat_ref, ccat_ref, ctx_ref, mask_ref, oh_ref,
                   e2d_wh_ref, e2d_bh_ref, e2d_wc_ref, e2d_bc_ref,
                   wih_ref, whh_ref, b_ref,
                   wp_e_ref, wp_h_ref, wp_c_ref, bp_ref,
                   w1_h_ref, w1_c_ref, b1_ref, wout_ref, bout_ref,
                   out_ref, yp_sc, pe_sc):
    """Enc2Dec bridge + all T pointer-generator decoder steps in one invocation."""
    T, Bp, Vp = out_ref.shape
    D = whh_ref.shape[0]

    # --- Encoder2Decoder bridge (folded; saves a separate pallas_call) ---
    h0 = jnp.tanh(jnp.dot(hcat_ref[...], e2d_wh_ref[...],
                          preferred_element_type=jnp.float32) + e2d_bh_ref[...])
    c0 = jnp.tanh(jnp.dot(ccat_ref[...], e2d_wc_ref[...],
                          preferred_element_type=jnp.float32) + e2d_bc_ref[...])

    # --- hoisted input-to-hidden projections: one wide matmul for all T steps ---
    y2d = y2d_ref[...]                                               # (T*Bp, E)
    yp_sc[...] = (jnp.dot(y2d, wih_ref[...],
                          preferred_element_type=jnp.float32) + b_ref[...])
    pe_sc[...] = jnp.sum(y2d * wp_e_ref[...], axis=-1, keepdims=True) + bp_ref[...]

    # --- step-invariant operands loaded once ---
    ctx = ctx_ref[...]          # (Bp, S, D)
    mask = mask_ref[...]        # (Bp, S)
    onehot = oh_ref[...]        # (Bp, S, Vp), built once in the wrapper
    whh = whh_ref[...]
    wp_h = wp_h_ref[...]
    wp_c = wp_c_ref[...]
    w1_h = w1_h_ref[...]
    w1_c = w1_c_ref[...]
    b1 = b1_ref[...]
    wout = wout_ref[...]
    bout = bout_ref[...]

    def step(t, carry):
        h, c = carry
        row = pl.multiple_of(t * Bp, Bp)

        # ---- decoder LSTM cell (fused gates) ----
        pre = yp_sc[pl.ds(row, Bp), :] + jnp.dot(h, whh,
                                                 preferred_element_type=jnp.float32)
        i_g = jax.nn.sigmoid(pre[:, 0:D])
        f_g = jax.nn.sigmoid(pre[:, D:2 * D])
        g_g = jnp.tanh(pre[:, 2 * D:3 * D])
        o_g = jax.nn.sigmoid(pre[:, 3 * D:4 * D])
        c2 = f_g * c + i_g * g_g
        h2 = o_g * jnp.tanh(c2)

        # ---- dot attention over encoder context (masked, stable softmax) ----
        scores = jnp.einsum('bd,bsd->bs', h2, ctx,
                            preferred_element_type=jnp.float32)
        scores = jnp.where(mask > 0, scores, -1e30)
        scores = scores - jnp.max(scores, axis=-1, keepdims=True)
        e = jnp.exp(scores) * mask
        attn = e / jnp.maximum(jnp.sum(e, axis=-1, keepdims=True), 1e-20)
        c_t = jnp.einsum('bs,bsd->bd', attn, ctx,
                         preferred_element_type=jnp.float32)

        # ---- pointer ratio: sigmoid(Linear([y_emb, lstm_out, c_t])) ----
        p_logit = (pe_sc[pl.ds(row, Bp), :]
                   + jnp.sum(h2 * wp_h, axis=-1, keepdims=True)
                   + jnp.sum(c_t * wp_c, axis=-1, keepdims=True))
        ratio = jax.nn.sigmoid(p_logit)                              # (Bp, 1)

        # ---- vocab distribution over the lane-padded extended vocab ----
        # wout/bout are padded; extra columns carry bias -1e30 so their softmax
        # probability is exactly 0 (== the extra_zeros concat in the reference).
        out1 = jnp.tanh(jnp.dot(h2, w1_h, preferred_element_type=jnp.float32)
                        + jnp.dot(c_t, w1_c, preferred_element_type=jnp.float32)
                        + b1)
        logits = jnp.dot(out1, wout, preferred_element_type=jnp.float32) + bout
        logits = logits - jnp.max(logits, axis=-1, keepdims=True)
        el = jnp.exp(logits)
        vocab_dist = el / jnp.sum(el, axis=-1, keepdims=True)        # (Bp, Vp)

        # ---- scatter_add over the extended vocab via one-hot contraction ----
        scattered = jnp.einsum('bs,bsv->bv', (1.0 - ratio) * attn, onehot,
                               preferred_element_type=jnp.float32)
        out_ref[t] = jnp.log(ratio * vocab_dist + scattered + 1e-12)
        return (h2, c2)

    jax.lax.fori_loop(0, T, step, (h0, c0))


def run_decoder(y2d, h_cat, c_cat, ctx, mask, onehot, p, wout_p, bout_p, T, Bp):
    D = p['whh'].shape[0]
    Vp = wout_p.shape[-1]
    return pl.pallas_call(
        decoder_kernel,
        out_shape=jax.ShapeDtypeStruct((T, Bp, Vp), jnp.float32),
        scratch_shapes=[pltpu.VMEM((T * Bp, 4 * D), jnp.float32),
                        pltpu.VMEM((T * Bp, 1), jnp.float32)],
    )(y2d, h_cat, c_cat, ctx, mask, onehot,
      p['e2d_wh'], p['e2d_bh'], p['e2d_wc'], p['e2d_bc'],
      p['wih'], p['whh'], p['b'],
      p['wp_e'], p['wp_h'], p['wp_c'], p['bp'],
      p['w1_h'], p['w1_c'], p['b1'], wout_p, bout_p)


# ----------------------------- model glue -----------------------------

def s2s_pointer_forward(p, src, lengths, tgt, enc_ext_idx):
    emb = p['emb_table']
    B, S = src.shape
    T = tgt.shape[1]
    E = emb.shape[-1]
    H = p['enc_f_whh'].shape[0]
    Vext = p['wout'].shape[-1]

    Bp = max(8, _round_up(B, 8))          # sublane-pad batch
    Vp = _round_up(Vext, 128)             # lane-pad extended vocab
    pad_b = Bp - B

    src_p = jnp.pad(src, ((0, pad_b), (0, 0)))                 # PAD rows -> zero emb
    tgt_p = jnp.pad(tgt, ((0, pad_b), (0, 0)))
    lengths_p = jnp.concatenate([lengths.astype(jnp.int32),
                                 jnp.full((pad_b,), S, jnp.int32)])
    idx_p = jnp.pad(enc_ext_idx.astype(jnp.int32), ((0, pad_b), (0, 0)))

    # embedding lookup (glue) + time-major flatten
    x2d = jnp.transpose(emb[src_p], (1, 0, 2)).reshape(S * Bp, E)
    y2d = jnp.transpose(emb[tgt_p], (1, 0, 2)).reshape(T * Bp, E)

    # bidirectional encoder: one pallas_call, the two directions on the grid
    wih_e = jnp.stack([p['enc_f_wih'], p['enc_b_wih']])        # (2, E, 4H)
    whh_e = jnp.stack([p['enc_f_whh'], p['enc_b_whh']])        # (2, H, 4H)
    b_e = jnp.stack([p['enc_f_b'], p['enc_b_b']])              # (2, 1, 4H)
    enc_tm, hn, cn = run_encoder(x2d, wih_e, whh_e, b_e, S, Bp)
    ctx = jnp.transpose(enc_tm, (2, 1, 0, 3)).reshape(Bp, S, 2 * H)   # (Bp, S, D)
    h_cat = jnp.concatenate([hn[0], hn[1]], axis=-1)           # (Bp, D)
    c_cat = jnp.concatenate([cn[0], cn[1]], axis=-1)

    # step-invariant decoder inputs built once (not per decoder step)
    mask = (jnp.arange(S)[None, :] < lengths_p[:, None]).astype(jnp.float32)
    onehot = (idx_p[:, :, None] ==
              jnp.arange(Vp, dtype=jnp.int32)[None, None, :]).astype(jnp.float32)
    wout_p = jnp.concatenate(
        [p['wout'], jnp.zeros((E, Vp - Vext), jnp.float32)], axis=1)
    bout_p = jnp.concatenate(
        [p['bout'], jnp.full((1, Vp - Vext), -1e30, jnp.float32)], axis=1)

    dists = run_decoder(y2d, h_cat, c_cat, ctx, mask, onehot, p, wout_p, bout_p, T, Bp)
    # torch.cat(dists, dim=0) of T blocks of (B, Vext)
    return dists[:, :B, :Vext].reshape(T * B, Vext)


# ----------------------------- pure-JAX reference -----------------------------

def _lstm_ref(x, wih, whh, b):
    S, B, _ = x.shape
    H = whh.shape[0]

    def step(carry, x_t):
        h, c = carry
        pre = x_t @ wih + h @ whh + b
        i = jax.nn.sigmoid(pre[:, 0:H])
        f = jax.nn.sigmoid(pre[:, H:2 * H])
        g = jnp.tanh(pre[:, 2 * H:3 * H])
        o = jax.nn.sigmoid(pre[:, 3 * H:4 * H])
        c2 = f * c + i * g
        h2 = o * jnp.tanh(c2)
        return (h2, c2), h2

    (h, c), outs = jax.lax.scan(step, (jnp.zeros((B, H)), jnp.zeros((B, H))), x)
    return outs, h, c


def s2s_pointer_reference(p, src, lengths, tgt, enc_ext_idx):
    emb = p['emb_table']
    B, S = src.shape
    T = tgt.shape[1]
    D = p['whh'].shape[0]
    x = jnp.transpose(emb[src], (1, 0, 2))
    fwd, h_f, c_f = _lstm_ref(x, p['enc_f_wih'], p['enc_f_whh'], p['enc_f_b'])
    bwd_r, h_b, c_b = _lstm_ref(x[::-1], p['enc_b_wih'], p['enc_b_whh'], p['enc_b_b'])
    ctx = jnp.transpose(jnp.concatenate([fwd, bwd_r[::-1]], axis=-1), (1, 0, 2))
    h = jnp.tanh(jnp.concatenate([h_f, h_b], -1) @ p['e2d_wh'] + p['e2d_bh'])
    c = jnp.tanh(jnp.concatenate([c_f, c_b], -1) @ p['e2d_wc'] + p['e2d_bc'])
    mask = (jnp.arange(S)[None, :] < lengths[:, None]).astype(jnp.float32)
    Vext = p['wout'].shape[-1]
    onehot = (enc_ext_idx[:, :, None] == jnp.arange(Vext)[None, None, :]).astype(jnp.float32)
    y_embs = jnp.transpose(emb[tgt], (1, 0, 2))
    dists = []
    for t in range(T):
        y = y_embs[t]
        pre = y @ p['wih'] + h @ p['whh'] + p['b']
        i_g = jax.nn.sigmoid(pre[:, 0:D])
        f_g = jax.nn.sigmoid(pre[:, D:2 * D])
        g_g = jnp.tanh(pre[:, 2 * D:3 * D])
        o_g = jax.nn.sigmoid(pre[:, 3 * D:4 * D])
        c = f_g * c + i_g * g_g
        h = o_g * jnp.tanh(c)
        scores = jnp.einsum('bd,bsd->bs', h, ctx)
        scores = jnp.where(mask > 0, scores, -1e30)
        scores = scores - jnp.max(scores, -1, keepdims=True)
        e = jnp.exp(scores) * mask
        attn = e / jnp.maximum(jnp.sum(e, -1, keepdims=True), 1e-20)
        c_t = jnp.einsum('bs,bsd->bd', attn, ctx)
        p_logit = (jnp.sum(y * p['wp_e'], -1, keepdims=True)
                   + jnp.sum(h * p['wp_h'], -1, keepdims=True)
                   + jnp.sum(c_t * p['wp_c'], -1, keepdims=True) + p['bp'])
        ratio = jax.nn.sigmoid(p_logit)
        out1 = jnp.tanh(h @ p['w1_h'] + c_t @ p['w1_c'] + p['b1'])
        logits = out1 @ p['wout'] + p['bout']
        logits = logits - jnp.max(logits, -1, keepdims=True)
        el = jnp.exp(logits)
        vocab_dist = el / jnp.sum(el, -1, keepdims=True)
        final = ratio * vocab_dist + jnp.einsum('bs,bsv->bv', (1 - ratio) * attn, onehot)
        dists.append(jnp.log(final + 1e-12))
    return jnp.concatenate(dists, axis=0)


# ----------------------------- parameter init -----------------------------

def init_params(key, vocab_size, emb_dim, hid_dim, n_extra):
    H = hid_dim
    D = 2 * hid_dim
    keys = jax.random.split(key, 32)
    it = iter(keys)

    def u(shape):  # matches nn.init.uniform_(-0.1, 0.1); biases are 0
        return jax.random.uniform(next(it), shape, jnp.float32, -0.1, 0.1)

    p = {}
    p['emb_table'] = u((vocab_size, emb_dim)).at[PAD].set(0.0)
    for d in ('f', 'b'):                             # encoder BiLSTM, fused gates i|f|g|o
        p[f'enc_{d}_wih'] = u((emb_dim, 4 * H))
        p[f'enc_{d}_whh'] = u((H, 4 * H))
        p[f'enc_{d}_b'] = jnp.zeros((1, 4 * H), jnp.float32)
    p['e2d_wh'] = u((D, D)); p['e2d_bh'] = jnp.zeros((1, D), jnp.float32)
    p['e2d_wc'] = u((D, D)); p['e2d_bc'] = jnp.zeros((1, D), jnp.float32)
    p['wih'] = u((emb_dim, 4 * D))                   # decoder LSTM (fused gates)
    p['whh'] = u((D, 4 * D))
    p['b'] = jnp.zeros((1, 4 * D), jnp.float32)
    p['wp_e'] = u((1, emb_dim))                      # pointer_lin split: [emb | lstm | ctx]
    p['wp_h'] = u((1, D))
    p['wp_c'] = u((1, D))
    p['bp'] = jnp.zeros((1, 1), jnp.float32)
    p['w1_h'] = u((D, emb_dim))                      # lin1 split: [lstm | ctx]
    p['w1_c'] = u((D, emb_dim))
    p['b1'] = jnp.zeros((1, emb_dim), jnp.float32)
    wout = u((emb_dim, vocab_size))                  # outlin, padded to extended vocab
    p['wout'] = jnp.concatenate([wout, jnp.zeros((emb_dim, n_extra), jnp.float32)], axis=1)
    bout = jnp.zeros((1, vocab_size), jnp.float32)
    p['bout'] = jnp.concatenate([bout, jnp.full((1, n_extra), -1e30, jnp.float32)], axis=1)
    return p


# ----------------------------- main -----------------------------

if __name__ == "__main__":
    jax.config.update("jax_default_matmul_precision", "highest")
    key = jax.random.PRNGKey(0)
    vocab_size, emb_dim, hid_dim = 16, 8, 16     # decoder hidden D = 2*hid_dim = 32
    B, S, T, n_extra = 2, 8, 4, 4
    Vext = vocab_size + n_extra

    kp, ks, kt, ke = jax.random.split(key, 4)
    params = init_params(kp, vocab_size, emb_dim, hid_dim, n_extra)
    src = jax.random.randint(ks, (B, S), 1, vocab_size)
    tgt = jax.random.randint(kt, (B, T), 1, vocab_size)
    lengths = jnp.array([S, S], jnp.int32)
    enc_ext_idx = jax.random.randint(ke, (B, S), 0, Vext)  # extended-vocab src ids
    # extra_zeros (B, n_extra) is represented by the -1e30 bias padding of outlin.

    out = s2s_pointer_forward(params, src, lengths, tgt, enc_ext_idx)
    out = jax.block_until_ready(out)

    ref = s2s_pointer_reference(params, src, lengths, tgt, enc_ext_idx)
    assert out.shape == (T * B, Vext)
    assert bool(jnp.all(jnp.isfinite(out)))
    np.testing.assert_allclose(np.asarray(out), np.asarray(ref), rtol=2e-3, atol=2e-3)
    print("KERNEL_OK")
</pallas_src>

<mosaic_0001>
module attributes {stable_mosaic.version = 11 : i64} {
  func.func @encoder_kernel(%arg0: i32, %arg1: memref<64x8xf32, #tpu.memory_space<vmem>>, %arg2: memref<1x8x64xf32, #tpu.memory_space<vmem>>, %arg3: memref<1x16x64xf32, #tpu.memory_space<vmem>>, %arg4: memref<1x1x64xf32, #tpu.memory_space<vmem>>, %arg5: memref<1x8x8x16xf32, #tpu.memory_space<vmem>>, %arg6: memref<1x8x16xf32, #tpu.memory_space<vmem>>, %arg7: memref<1x8x16xf32, #tpu.memory_space<vmem>>, %arg8: memref<64x64xf32, #tpu.memory_space<vmem>>) attributes {dimension_semantics = [#tpu.dimension_semantics<parallel>], iteration_bounds = array<i64: 2>, scalar_prefetch = 0 : i64, scratch_operands = 1 : i64, tpu.core_type = #tpu.core_type<tc>, window_params = [{pipeline_mode = #tpu.pipeline_mode<synchronous>, transform_indices = @transform_0, window_bounds = array<i64: 64, 8>}, {transform_indices = @transform_1, window_bounds = array<i64: 1, 8, 64>}, {transform_indices = @transform_2, window_bounds = array<i64: 1, 16, 64>}, {transform_indices = @transform_3, window_bounds = array<i64: 1, 1, 64>}, {transform_indices = @transform_4, window_bounds = array<i64: 1, 8, 8, 16>}, {transform_indices = @transform_5, window_bounds = array<i64: 1, 8, 16>}, {transform_indices = @transform_6, window_bounds = array<i64: 1, 8, 16>}]} {
    %c0 = arith.constant 0 : index
    %c0_0 = arith.constant 0 : index
    %0 = vector.load %arg1[%c0, %c0_0] : memref<64x8xf32, #tpu.memory_space<vmem>>, vector<64x8xf32>
    %c0_1 = arith.constant 0 : index
    %c0_2 = arith.constant 0 : index
    %c0_3 = arith.constant 0 : index
    %1 = vector.load %arg2[%c0_1, %c0_2, %c0_3] : memref<1x8x64xf32, #tpu.memory_space<vmem>>, vector<1x8x64xf32>
    %2 = vector.shape_cast %1 : vector<1x8x64xf32> to vector<8x64xf32>
    %cst = arith.constant dense<0.000000e+00> : vector<64x64xf32>
    %3 = tpu.matmul %0, %2, %cst {dimension_numbers = #tpu.dot_dimension_numbers<[1], [0], [0], [1], [0, 0, 1, 1], [], []>, precision = #tpu.contract_precision<fp32>} : vector<64x8xf32>, vector<8x64xf32>, vector<64x64xf32> -> vector<64x64xf32>
    %c0_4 = arith.constant 0 : index
    %c0_5 = arith.constant 0 : index
    %c0_6 = arith.constant 0 : index
    %4 = vector.load %arg4[%c0_4, %c0_5, %c0_6] : memref<1x1x64xf32, #tpu.memory_space<vmem>>, vector<1x1x64xf32>
    %5 = vector.shape_cast %4 : vector<1x1x64xf32> to vector<1x64xf32>
    %6 = vector.broadcast %5 : vector<1x64xf32> to vector<64x64xf32>
    %7 = arith.addf %3, %6 : vector<64x64xf32>
    %c0_7 = arith.constant 0 : index
    %c0_8 = arith.constant 0 : index
    %8 = vector.load %arg8[%c0_7, %c0_8] : memref<64x64xf32, #tpu.memory_space<vmem>>, vector<64x64xf32>
    tpu.vector_store %arg8[%c0_7, %c0_8], %7 {strides = array<i32>} : memref<64x64xf32, #tpu.memory_space<vmem>>, vector<64x64xf32>,
    %c0_9 = arith.constant 0 : index
    %c0_10 = arith.constant 0 : index
    %c0_11 = arith.constant 0 : index
    %9 = vector.load %arg3[%c0_9, %c0_10, %c0_11] : memref<1x16x64xf32, #tpu.memory_space<vmem>>, vector<1x16x64xf32>
    %10 = vector.shape_cast %9 : vector<1x16x64xf32> to vector<16x64xf32>
    %cst_12 = arith.constant 0.000000e+00 : f32
    %11 = vector.broadcast %cst_12 : f32 to vector<8x16xf32>
    %cst_13 = arith.constant 0.000000e+00 : f32
    %12 = vector.broadcast %cst_13 : f32 to vector<8x16xf32>
    %c0_i32 = arith.constant 0 : i32
    %c8_i32 = arith.constant 8 : i32
    %13 = arith.addi %c0_i32, %c8_i32 : i32
    %c1_i32 = arith.constant 1 : i32
    %14:2 = scf.for %arg9 = %c0_i32 to %13 step %c1_i32 iter_args(%arg10 = %11, %arg11 = %12) -> (vector<8x16xf32>, vector<8x16xf32>)  : i32 {
      %c0_i32_21 = arith.constant 0 : i32
      %21 = arith.cmpi eq, %arg0, %c0_i32_21 : i32
      %c7_i32 = arith.constant 7 : i32
      %22 = arith.subi %c7_i32, %arg9 : i32
      %23 = arith.select %21, %arg9, %22 : i32
      %c8_i32_22 = arith.constant 8 : i32
      %24 = arith.muli %23, %c8_i32_22 : i32
      %25 = tpu.assume_multiple %24, 8 : i32
      %26 = arith.index_cast %25 : i32 to index
      %c0_23 = arith.constant 0 : index
      %27 = vector.load %arg8[%26, %c0_23] : memref<64x64xf32, #tpu.memory_space<vmem>>, vector<8x64xf32>
      %cst_24 = arith.constant dense<0.000000e+00> : vector<8x64xf32>
      %28 = tpu.matmul %arg10, %10, %cst_24 {dimension_numbers = #tpu.dot_dimension_numbers<[1], [0], [0], [1], [0, 0, 1, 1], [], []>, precision = #tpu.contract_precision<fp32>} : vector<8x16xf32>, vector<16x64xf32>, vector<8x64xf32> -> vector<8x64xf32>
      %29 = arith.addf %27, %28 : vector<8x64xf32>
      %30 = vector.extract_strided_slice %29 {offsets = [0, 0], sizes = [8, 16], strides = [1, 1]} : vector<8x64xf32> to vector<8x16xf32>
      %31 = arith.negf %30 : vector<8x16xf32>
      %32 = math.exp %31 : vector<8x16xf32>
      %cst_25 = arith.constant 1.000000e+00 : f32
      %33 = vector.broadcast %cst_25 : f32 to vector<8x16xf32>
      %34 = arith.addf %33, %32 : vector<8x16xf32>
      %35 = arith.divf %33, %34 : vector<8x16xf32>
      %36 = vector.extract_strided_slice %29 {offsets = [0, 16], sizes = [8, 16], strides = [1, 1]} : vector<8x64xf32> to vector<8x16xf32>
      %37 = arith.negf %36 : vector<8x16xf32>
      %38 = math.exp %37 : vector<8x16xf32>
      %cst_26 = arith.constant 1.000000e+00 : f32
      %39 = vector.broadcast %cst_26 : f32 to vector<8x16xf32>
      %40 = arith.addf %39, %38 : vector<8x16xf32>
      %41 = arith.divf %39, %40 : vector<8x16xf32>
      %42 = vector.extract_strided_slice %29 {offsets = [0, 32], sizes = [8, 16], strides = [1, 1]} : vector<8x64xf32> to vector<8x16xf32>
      %43 = math.tanh %42 : vector<8x16xf32>
      %44 = vector.extract_strided_slice %29 {offsets = [0, 48], sizes = [8, 16], strides = [1, 1]} : vector<8x64xf32> to vector<8x16xf32>
      %45 = arith.negf %44 : vector<8x16xf32>
      %46 = math.exp %45 : vector<8x16xf32>
      %cst_27 = arith.constant 1.000000e+00 : f32
      %47 = vector.broadcast %cst_27 : f32 to vector<8x16xf32>
      %48 = arith.addf %47, %46 : vector<8x16xf32>
      %49 = arith.divf %47, %48 : vector<8x16xf32>
      %50 = arith.mulf %41, %arg11 : vector<8x16xf32>
      %51 = arith.mulf %35, %43 : vector<8x16xf32>
      %52 = arith.addf %50, %51 : vector<8x16xf32>
      %53 = math.tanh %52 : vector<8x16xf32>
      %54 = arith.mulf %49, %53 : vector<8x16xf32>
      %c0_28 = arith.constant 0 : index
      %55 = arith.index_cast %23 : i32 to index
      %c0_29 = arith.constant 0 : index
      %c0_30 = arith.constant 0 : index
      %56 = vector.load %arg5[%c0_28, %55, %c0_29, %c0_30] : memref<1x8x8x16xf32, #tpu.memory_space<vmem>>, vector<1x1x8x16xf32>
      %57 = vector.shape_cast %56 : vector<1x1x8x16xf32> to vector<8x16xf32>
      %58 = vector.shape_cast %54 : vector<8x16xf32> to vector<1x1x8x16xf32>
      tpu.vector_store %arg5[%c0_28, %55, %c0_29, %c0_30], %58 {strides = array<i32>} : memref<1x8x8x16xf32, #tpu.memory_space<vmem>>, vector<1x1x8x16xf32>,
      scf.yield %54, %52 : vector<8x16xf32>, vector<8x16xf32>
    }
    %c8_i32_14 = arith.constant 8 : i32
    %c0_15 = arith.constant 0 : index
    %c0_16 = arith.constant 0 : index
    %c0_17 = arith.constant 0 : index
    %15 = vector.load %arg6[%c0_15, %c0_16, %c0_17] : memref<1x8x16xf32, #tpu.memory_space<vmem>>, vector<1x8x16xf32>
    %16 = vector.shape_cast %15 : vector<1x8x16xf32> to vector<8x16xf32>
    %17 = vector.shape_cast %14#0 : vector<8x16xf32> to vector<1x8x16xf32>
    tpu.vector_store %arg6[%c0_15, %c0_16, %c0_17], %17 {strides = array<i32>} : memref<1x8x16xf32, #tpu.memory_space<vmem>>, vector<1x8x16xf32>,
    %c0_18 = arith.constant 0 : index
    %c0_19 = arith.constant 0 : index
    %c0_20 = arith.constant 0 : index
    %18 = vector.load %arg7[%c0_18, %c0_19, %c0_20] : memref<1x8x16xf32, #tpu.memory_space<vmem>>, vector<1x8x16xf32>
    %19 = vector.shape_cast %18 : vector<1x8x16xf32> to vector<8x16xf32>
    %20 = vector.shape_cast %14#1 : vector<8x16xf32> to vector<1x8x16xf32>
    tpu.vector_store %arg7[%c0_18, %c0_19, %c0_20], %20 {strides = array<i32>} : memref<1x8x16xf32, #tpu.memory_space<vmem>>, vector<1x8x16xf32>,
    return
  }
  func.func @transform_0(%arg0: i32) -> (i32, i32) {
    %c0_i32 = arith.constant 0 : i32
    %c0_i32_0 = arith.constant 0 : i32
    %c0_i32_1 = arith.constant 0 : i32
    return %c0_i32, %c0_i32_0 : i32, i32
  }
  func.func @transform_1(%arg0: i32) -> (i32, i32, i32) {
    %c0_i32 = arith.constant 0 : i32
    %c0_i32_0 = arith.constant 0 : i32
    %c0_i32_1 = arith.constant 0 : i32
    return %arg0, %c0_i32, %c0_i32_0 : i32, i32, i32
  }
  func.func @transform_2(%arg0: i32) -> (i32, i32, i32) {
    %c0_i32 = arith.constant 0 : i32
    %c0_i32_0 = arith.constant 0 : i32
    %c0_i32_1 = arith.constant 0 : i32
    return %arg0, %c0_i32, %c0_i32_0 : i32, i32, i32
  }
  func.func @transform_3(%arg0: i32) -> (i32, i32, i32) {
    %c0_i32 = arith.constant 0 : i32
    %c0_i32_0 = arith.constant 0 : i32
    %c0_i32_1 = arith.constant 0 : i32
    return %arg0, %c0_i32, %c0_i32_0 : i32, i32, i32
  }
  func.func @transform_4(%arg0: i32) -> (i32, i32, i32, i32) {
    %c0_i32 = arith.constant 0 : i32
    %c0_i32_0 = arith.constant 0 : i32
    %c0_i32_1 = arith.constant 0 : i32
    %c0_i32_2 = arith.constant 0 : i32
    return %arg0, %c0_i32, %c0_i32_0, %c0_i32_1 : i32, i32, i32, i32
  }
  func.func @transform_5(%arg0: i32) -> (i32, i32, i32) {
    %c0_i32 = arith.constant 0 : i32
    %c0_i32_0 = arith.constant 0 : i32
    %c0_i32_1 = arith.constant 0 : i32
    return %arg0, %c0_i32, %c0_i32_0 : i32, i32, i32
  }
  func.func @transform_6(%arg0: i32) -> (i32, i32, i32) {
    %c0_i32 = arith.constant 0 : i32
    %c0_i32_0 = arith.constant 0 : i32
    %c0_i32_1 = arith.constant 0 : i32
    return %arg0, %c0_i32, %c0_i32_0 : i32, i32, i32
  }
}

</mosaic_0001>

<bundles_post_ra>
// kernel: tpu_custom_call.1
= control target key start
LH: loop header
LB: loop body
LE: loop exit
PB: predicated region body
PF: predicated region fallthrough
CT: control target
= control target key end

     0   :  { %12 = vsyncpa [#allocation4], 0  ;;  %s2714_s0 = inlined_call_operand.vmem [shape: f32[64,8], index: 0, kind: input, shape index: {}]   ;;  %s2715_s1 = inlined_call_operand.vmem [shape: f32[2,8,64], index: 1, kind: input, shape index: {}]   ;;  %s2716_s2 = inlined_call_operand.vmem [shape: f32[2,16,64], index: 2, kind: input, shape index: {}]   ;;  %s2717_s3 = inlined_call_operand.vmem [shape: f32[2,1,64], index: 3, kind: input, shape index: {}]   ;;  %s2718_s4 = inlined_call_operand.hbm [shape: f32[2,8,8,16], index: 4, kind: output, shape index: {0}]   ;;  %s2719_s5 = inlined_call_operand.hbm [shape: f32[2,8,16], index: 5, kind: output, shape index: {1}]   ;;  %s2720_s6 = inlined_call_operand.hbm [shape: f32[2,8,16], index: 6, kind: output, shape index: {2}]  }
   0x1   :  { %14 = vsyncpa [#allocation4 + $0x1], 0 }
   0x2   :  { %15 = vsyncpa [#allocation6], 0 }
   0x3   :  { %17 = vsyncpa [#allocation6 + $0x1], 0  ;;  %s2331_s21 = smov 0   ;;  %s2333_s22 = smov 0  }
   0x4   :  { %s2335_s23 = smov 0   ;;  %s2337_s24 = smov 0  }
   0x5 LB: > { %s2352_s25 = sadd.s32 4294967295, %s2269_s24   ;;  %s2721_s26 = sadd.s32 4294967294, %s2269_s24   ;;  %s2269_s24 = sphi %s2337_s24, %s2730_s24   ;;  %s2265_s23 = sphi %s2335_s23, %s2729_s23   ;;  %s2261_s22 = sphi %s2333_s22, %s2728_s22   ;;  %s2257_s21 = sphi %s2331_s21, %s2727_s21  }
   0x6   : > { %s2356_s27 = sadd.s32 1, %s2269_s24   ;;  %s129_s28 = sadd.s32 1, %s2265_s23 }
   0x7   : > { %s126_s29 = ssub.s32 %s2269_s24, %s2356_s27  ;;  %p139_p0 = scmp.ne.s32.totalorder %s2265_s23, %s2261_s22 }
   0x8   : > { %p127_p1 = scmp.eq.s32.totalorder %s126_s29, 0  ;;  %p140_p2 = scmp.eq.s32.totalorder %s2352_s25, 1 }
   0x9   : > { %p145_p3 = scmp.ne.s32.totalorder %s2261_s22, %s2257_s21  ;;  %p146_p4 = scmp.eq.s32.totalorder %s2721_s26, 1 }
   0xa   : > { %s2369_s30 = scalar_select %p127_p1, %s2265_s23, %s129_s28  }
   0xb   : > { %p2371_p5 = por %p140_p2, %p139_p0  ;;  %p2375_p6 = por %p146_p4, %p145_p3 }
   0xc   : > { %p1831_p7 = scmp.ge.s32.totalorder %s2269_s24, 1  ;;  %p240_p8 = scmp.lt.s32.totalorder %s2269_s24, 3 }
   0xe   : > { %p241_p9 = pnand %p1831_p7, %p240_p8 }
   0xf   : > { %s2382_s9 = sand.u32 (!%p241_p9), 1, %s2261_s22   ;;  %p287_p10 = scmp.lt.s32.totalorder (!%p241_p9), %s2352_s25, 1 }
  0x10   : > { %244 = sbr.rel (%p241_p9) target bundleno = 1179 (0x49b), region = 36  ;;  %s1832_s16 = sshll.u32 (!%p241_p9), %s2382_s9, 6 }
  0x11   : > { %s1833_s17 = sshll.u32 (!%p241_p9), %s2382_s9, 3  ;;  %s2563_s28 = smov (!%p241_p9), 0  }
  0x12   : > { %s2557_s20 = scalar_lea.vmem (!%p241_p9), [#allocation7], %s1833_s17 }
  0x15   : > { %v299_v0 = vld [vmem:[%s2714_s0] sm:$0xff]  ;;  %vm315_vm0 = vcmask 64512   ;;  %v300_v1 = vld [vmem:[%s2714_s0 + $0x8] sm:$0xff]  ;;  %v301_v2 = vld [vmem:[%s2714_s0 + $0x10] sm:$0xff]  ;;  %s2423_s13 = scalar_select %p287_p10, %s2352_s25, 1  ;;  %vm1087_vm1 = vcmask 523264  }
  0x16   : > { %v317_v3 = vsel %vm315_vm0, %v299_v0, 0  ;;  %v320_v4 = vsel %vm315_vm0, %v300_v1, 0  ;;  %v323_v5 = vsel %vm315_vm0, %v301_v2, 0  ;;  %v302_v6 = vld [vmem:[%s2714_s0 + $0x18] sm:$0xff]  ;;  %v303_v12 = vld [vmem:[%s2714_s0 + $0x20] sm:$0xff]  ;;  %v304_v13 = vld [vmem:[%s2714_s0 + $0x28] sm:$0xff] }
  0x17   : > { %v2402_v7 = vand.u32 4294901760, %v317_v3  ;;  %v2404_v8 = vand.u32 4294901760, %v320_v4  ;;  %v2406_v9 = vand.u32 4294901760, %v323_v5  ;;  %v326_v10 = vsel %vm315_vm0, %v302_v6, 0  ;;  %v305_v14 = vld [vmem:[%s2714_s0 + $0x30] sm:$0xff]  ;;  %v306_v19 = vld [vmem:[%s2714_s0 + $0x38] sm:$0xff] }
  0x18   : > { %v2409_v11 = vand.u32 4294901760, %v326_v10  ;;  %v329_v18 = vsel %vm315_vm0, %v303_v12, 0  ;;  %v332_v22 = vsel %vm315_vm0, %v304_v13, 0  ;;  %v335_v23 = vsel %vm315_vm0, %v305_v14, 0  ;;  %s1835_s18 = sshll.u32 %s2423_s13, 3  ;;  %s1850_s19 = sshll.u32 %s2423_s13, 4 }
  0x19   : > { %v2426_v15 = vsub.f32 %v317_v3, %v2402_v7  ;;  %v2429_v16 = vsub.f32 %v320_v4, %v2404_v8  ;;  %v2432_v17 = vsub.f32 %v323_v5, %v2406_v9  ;;  %1940 = vmatprep.mubr.f32.mxu1 %v2402_v7  ;;  %v2442_v21 = vand.u32 4294901760, %v329_v18  ;;  %s290_s29 = scalar_lea.vmem %s2715_s1, %s1835_s18  ;;  %s295_s12 = scalar_lea.vmem %s2716_s2, %s1850_s19 }
  0x1a   : > { %v2440_v20 = vsub.f32 %v326_v10, %v2409_v11  ;;  %v2451_v27 = vand.u32 4294901760, %v332_v22  ;;  %v2463_v30 = vand.u32 4294901760, %v335_v23  ;;  %v338_v31 = vsel %vm315_vm0, %v306_v19, 0  ;;  %v307_v32 = vld [vmem:[%s290_s29] sm:$0xff]  ;;  %v2468_v34 = vld [vmem:[%s295_s12 + $0x8] sm:$0xff]  ;;  %s298_s18 = scalar_lea.vmem %s2717_s3, %s2423_s13  ;;  %s2549_s13 = scalar_lea.vmem [#allocation3], %s1832_s16 }
  0x1b   : > { %v408_v24 = vand.u32 4294901760, %v2426_v15  ;;  %v418_v25 = vand.u32 4294901760, %v2429_v16  ;;  %v428_v26 = vand.u32 4294901760, %v2432_v17  ;;  %v2461_v29 = vsub.f32 %v329_v18, %v2442_v21  ;;  %v2466_v33 = vld [vmem:[%s295_s12] sm:$0xff]  ;;  %s2553_s19 = scalar_lea.vmem [#allocation5], %s1833_s17 }
  0x1c   : > { %v438_v28 = vand.u32 4294901760, %v2440_v20  ;;  %v2480_v38 = vsub.f32 %v332_v22, %v2451_v27  ;;  %v371_v39 = vand.u32 4294901760, %v307_v32  ;;  %v2487_v42 = vsub.f32 %v335_v23, %v2463_v30  ;;  %v1838_v22 = vld [vmem:[%s298_s18] ss:$0 sm:$0xff] }
  0x1d   : > { %v409_v35 = vsub.f32 %v2426_v15, %v408_v24  ;;  %v419_v36 = vsub.f32 %v2429_v16, %v418_v25  ;;  %v429_v37 = vsub.f32 %v2432_v17, %v428_v26  ;;  %v448_v41 = vand.u32 4294901760, %v2461_v29 }
  0x1e   : > { %v439_v40 = vsub.f32 %v2440_v20, %v438_v28  ;;  %v458_v46 = vand.u32 4294901760, %v2480_v38  ;;  %1924 = vmatprep.subr.mxu0 %v371_v39  ;;  %v518_v47 = vsub.f32 %v307_v32, %v371_v39  ;;  %v468_v49 = vand.u32 4294901760, %v2487_v42 }
  0x1f   : > { %v410_v43 = vand.u32 4294901760, %v409_v35  ;;  %v420_v44 = vand.u32 4294901760, %v419_v36  ;;  %v430_v45 = vand.u32 4294901760, %v429_v37  ;;  %v449_v48 = vsub.f32 %v2461_v29, %v448_v41  ;;  %1925 = vmatpush3.msra.mxu0 %v371_v39 }
  0x20   : > { %v2492_v50 = vand.u32 4294901760, %v338_v31  ;;  %v440_v51 = vand.u32 4294901760, %v439_v40  ;;  %v519_v52 = vand.u32 4294901760, %v518_v47  ;;  %1952 = vmatprep.subr.mxu0 %v518_v47  ;;  %v459_v54 = vsub.f32 %v2480_v38, %v458_v46 }
  0x21   : > { %1926 = vmatprep.mubr.f32.mxu0 %v410_v43  ;;  %v450_v53 = vand.u32 4294901760, %v449_v48  ;;  %v469_v57 = vsub.f32 %v2487_v42, %v468_v49 }
  0x22   : > { %1927 = vmatmul.mubr.f32.vlgmr.msra.gmra.mxu0 %v420_v44  ;;  %v477_v55 = vsub.f32 %v338_v31, %v2492_v50  ;;  %v520_v56 = vsub.f32 %v518_v47, %v519_v52  ;;  %v460_v60 = vand.u32 4294901760, %v459_v54 }
  0x23   : > { %1929 = vmatprep.mubr.f32.mxu0 %v430_v45  ;;  %1953 = vmatpush3.msra.mxu0 %v518_v47  ;;  %v470_v62 = vand.u32 4294901760, %v469_v57 }
  0x24   : > { %1980 = vmatprep.subr.mxu0 %v519_v52  ;;  %v478_v58 = vand.u32 4294901760, %v477_v55  ;;  %v521_v59 = vand.u32 4294901760, %v520_v56 }
  0x26   : > { %1930 = vmatmul.mubr.f32.gmra.mxu0 %v440_v51  ;;  %v479_v61 = vsub.f32 %v477_v55, %v478_v58  ;;  %1938 = vmatprep.subr.mxu1 %v521_v59 }
  0x27   : > { %1932 = vmatprep.mubr.f32.mxu0 %v450_v53  ;;  %1939 = vmatpush3.msra.mxu1 %v521_v59 }
  0x28   : > { %1941 = vmatmul.mubr.f32.vlgmr.msra.gmra.mxu1 %v2404_v8  ;;  %1966 = vmatprep.subr.mxu1 %v371_v39  ;;  %v480_v63 = vand.u32 4294901760, %v479_v61 }
  0x29   : > { %1967 = vmatpush3.msra.mxu1 %v371_v39  ;;  %1943 = vmatprep.mubr.f32.mxu1 %v2406_v9 }
  0x2a   : > { %1933 = vmatmul.mubr.f32.gmra.mxu0 %v460_v60  ;;  %1994 = vmatprep.subr.mxu1 %v371_v39 }
  0x2b   : > { %1935 = vmatprep.mubr.f32.mxu0 %v470_v62 }
  0x2c   : > { %1944 = vmatmul.mubr.f32.gmra.mxu1 %v2409_v11 }
  0x2d   : > { %1946 = vmatprep.mubr.f32.mxu1 %v2442_v21 }
  0x2e   : > { %1936 = vmatmul.mubr.f32.gmra.mxu0 %v480_v63 }
  0x2f   : > { %1954 = vmatprep.mubr.f32.mxu0 %v2426_v15 }
  0x30   : > { %1947 = vmatmul.mubr.f32.gmra.mxu1 %v2451_v27 }
  0x31   : > { %1949 = vmatprep.mubr.f32.mxu1 %v2463_v30 }
  0x32   : > { %1955 = vmatmul.mubr.f32.vlgmr.msra.gmra.mxu0 %v2429_v16 }
  0x33   : > { %1957 = vmatprep.mubr.f32.mxu0 %v2432_v17  ;;  %1981 = vmatpush3.msra.mxu0 %v519_v52 }
  0x34   : > { %1950 = vmatmul.mubr.f32.gmra.mxu1 %v2492_v50 }
  0x35   : > { %1968 = vmatprep.mubr.f32.mxu1 %v408_v24 }
  0x36   : > { %1958 = vmatmul.mubr.f32.gmra.mxu0 %v2440_v20 }
  0x37   : > { %1960 = vmatprep.mubr.f32.mxu0 %v2461_v29 }
  0x38   : > { %1969 = vmatmul.mubr.f32.vlgmr.msra.gmra.mxu1 %v418_v25 }
  0x39   : > { %1995 = vmatpush3.msra.mxu1 %v371_v39  ;;  %1971 = vmatprep.mubr.f32.mxu1 %v428_v26 }
  0x3a   : > { %1961 = vmatmul.mubr.f32.gmra.mxu0 %v2480_v38 }
  0x3b   : > { %1963 = vmatprep.mubr.f32.mxu0 %v2487_v42 }
  0x3c   : > { %1972 = vmatmul.mubr.f32.gmra.mxu1 %v438_v28 }
  0x3d   : > { %1974 = vmatprep.mubr.f32.mxu1 %v448_v41 }
  0x3e   : > { %1964 = vmatmul.mubr.f32.gmra.mxu0 %v477_v55 }
  0x3f   : > { %1982 = vmatprep.mubr.f32.mxu0 %v2402_v7 }
  0x40   : > { %1975 = vmatmul.mubr.f32.gmra.mxu1 %v458_v46 }
  0x41   : > { %1977 = vmatprep.mubr.f32.mxu1 %v468_v49 }
  0x42   : > { %1983 = vmatmul.mubr.f32.vlgmr.msra.gmra.mxu0 %v2404_v8 }
  0x43   : > { %1985 = vmatprep.mubr.f32.mxu0 %v2406_v9 }
  0x44   : > { %1978 = vmatmul.mubr.f32.gmra.mxu1 %v478_v58 }
  0x45   : > { %1996 = vmatprep.mubr.f32.mxu1 %v2402_v7 }
  0x46   : > { %1986 = vmatmul.mubr.f32.gmra.mxu0 %v2409_v11 }
  0x47   : > { %1988 = vmatprep.mubr.f32.mxu0 %v2442_v21 }
  0x48   : > { %1997 = vmatmul.mubr.f32.vlgmr.msra.gmra.mxu1 %v2404_v8 }
  0x49   : > { %1999 = vmatprep.mubr.f32.mxu1 %v2406_v9 }
  0x4a   : > { %1989 = vmatmul.mubr.f32.gmra.mxu0 %v2451_v27 }
  0x4b   : > { %1991 = vmatprep.mubr.f32.mxu0 %v2463_v30 }
  0x4c   : > { %2000 = vmatmul.mubr.f32.gmra.mxu1 %v2409_v11 }
  0x4d   : > { %2002 = vmatprep.mubr.f32.mxu1 %v2442_v21 }
  0x4e   : > { %1992 = vmatmul.mubr.f32.gmra.mxu0 %v2492_v50 }
  0x50   : > { %2003 = vmatmul.mubr.f32.gmra.mxu1 %v2451_v27 }
  0x51   : > { %2005 = vmatprep.mubr.f32.mxu1 %v2463_v30 }
  0x54   : > { %2006 = vmatmul.mubr.f32.gmra.mxu1 %v2492_v50 }
  0xe2   : > { %v1928_v0 = vpop.f32.mrf.mxu0 }
  0xe3   : > { %v423_v26 = vadd.f32 %v1928_v0, %v1838_v22 }
  0xe4   : > { %v412_v1 = vpop.f32.mrf.mxu0 }
  0xe5   : > { %v413_v31 = vadd.f32 %v1838_v22, %v412_v1 }
  0xe6   : > { %v1931_v2 = vpop.f32.mrf.mxu0 }
  0xe7   : > { %v443_v32 = vadd.f32 %v1931_v2, %v1838_v22 }
  0xe8   : > { %v432_v3 = vpop.f32.mrf.mxu0  ;;  %v1942_v4 = vpop.f32.mrf.mxu1 }
  0xe9   : > { %v565_v35 = vadd.f32 %v1942_v4, %v423_v26  ;;  %v433_v43 = vadd.f32 %v1838_v22, %v432_v3 }
  0xea   : > { %v1934_v5 = vpop.f32.mrf.mxu0  ;;  %v558_v6 = vpop.f32.mrf.mxu1 }
  0xeb   : > { %v559_v38 = vadd.f32 %v558_v6, %v413_v31  ;;  %v463_v41 = vadd.f32 %v1934_v5, %v1838_v22 }
  0xec   : > { %v452_v7 = vpop.f32.mrf.mxu0  ;;  %v1945_v8 = vpop.f32.mrf.mxu1 }
  0xed   : > { %v577_v44 = vadd.f32 %v1945_v8, %v443_v32  ;;  %v453_v54 = vadd.f32 %v1838_v22, %v452_v7 }
  0xee   : > { %v1937_v9 = vpop.f32.mrf.mxu0  ;;  %v570_v10 = vpop.f32.mrf.mxu1 }
  0xef   : > { %v571_v49 = vadd.f32 %v570_v10, %v433_v43  ;;  %v483_v55 = vadd.f32 %v1937_v9, %v1838_v22 }
  0xf0   : > { %v472_v11 = vpop.f32.mrf.mxu0  ;;  %v1948_v12 = vpop.f32.mrf.mxu1 }
  0xf1   : > { %v589_v56 = vadd.f32 %v1948_v12, %v463_v41  ;;  %v473_v6 = vadd.f32 %v1838_v22, %v472_v11 }
  0xf2   : > { %v1956_v13 = vpop.f32.mrf.mxu0  ;;  %v582_v14 = vpop.f32.mrf.mxu1 }
  0xf3   : > { %v682_v39 = vadd.f32 %v1956_v13, %v565_v35  ;;  %v583_v63 = vadd.f32 %v582_v14, %v453_v54 }
  0xf4   : > { %v674_v15 = vpop.f32.mrf.mxu0  ;;  %v1951_v16 = vpop.f32.mrf.mxu1 }
  0xf5   : > { %v675_v45 = vadd.f32 %v674_v15, %v559_v38  ;;  %v601_v7 = vadd.f32 %v1951_v16, %v483_v55  ;;  %v2561_v38 = vmov 0.0  }
  0xf6   : > { %v1959_v17 = vpop.f32.mrf.mxu0  ;;  %v594_v18 = vpop.f32.mrf.mxu1 }
  0xf7   : > { %v696_v50 = vadd.f32 %v1959_v17, %v577_v44  ;;  %v595_v15 = vadd.f32 %v594_v18, %v473_v6 }
  0xf8   : > { %v688_v19 = vpop.f32.mrf.mxu0  ;;  %v1970_v20 = vpop.f32.mrf.mxu1 }
  0xf9   : > { %v806_v46 = vadd.f32 %v1970_v20, %v682_v39  ;;  %v689_v58 = vadd.f32 %v688_v19, %v571_v49 }
  0xfa   : > { %v1962_v21 = vpop.f32.mrf.mxu0  ;;  %v797_v23 = vpop.f32.mrf.mxu1 }
  0xfb   : > { %v798_v51 = vadd.f32 %v797_v23, %v675_v45  ;;  %v710_v1 = vadd.f32 %v1962_v21, %v589_v56 }
  0xfc   : > { %v702_v24 = vpop.f32.mrf.mxu0  ;;  %v1973_v25 = vpop.f32.mrf.mxu1 }
  0xfd   : > { %v822_v59 = vadd.f32 %v1973_v25, %v696_v50  ;;  %v703_v9 = vadd.f32 %v702_v24, %v583_v63 }
  0xfe   : > { %v1965_v27 = vpop.f32.mrf.mxu0  ;;  %v813_v28 = vpop.f32.mrf.mxu1 }
  0xff   : > { %v814_v2 = vadd.f32 %v813_v28, %v689_v58  ;;  %v724_v19 = vadd.f32 %v1965_v27, %v601_v7 }
 0x100   : > { %v716_v29 = vpop.f32.mrf.mxu0  ;;  %v1976_v30 = vpop.f32.mrf.mxu1 }
 0x101   : > { %v838_v10 = vadd.f32 %v1976_v30, %v710_v1  ;;  %v717_v26 = vadd.f32 %v716_v29, %v595_v15 }
 0x102   : > { %v1984_v36 = vpop.f32.mrf.mxu0  ;;  %v829_v37 = vpop.f32.mrf.mxu1 }
 0x103   : > { %v934_v52 = vadd.f32 %v1984_v36, %v806_v46  ;;  %v830_v20 = vadd.f32 %v829_v37, %v703_v9  ;;  %v2559_v37 = vmov 0.0  }
 0x104   : > { %v927_v40 = vpop.f32.mrf.mxu0  ;;  %v1979_v42 = vpop.f32.mrf.mxu1 }
 0x105   : > { %v928_v60 = vadd.f32 %v927_v40, %v798_v51  ;;  %v854_v11 = vadd.f32 %v1979_v42, %v724_v19 }
 0x106   : > { %v1987_v47 = vpop.f32.mrf.mxu0  ;;  %v845_v48 = vpop.f32.mrf.mxu1 }
 0x107   : > { %v946_v3 = vadd.f32 %v1987_v47, %v822_v59  ;;  %v846_v28 = vadd.f32 %v845_v48, %v717_v26 }
 0x108   : > { %v939_v53 = vpop.f32.mrf.mxu0  ;;  %v1998_v57 = vpop.f32.mrf.mxu1 }
 0x109   : > { %v1048_v61 = vadd.f32 %v1998_v57, %v934_v52  ;;  %v940_v12 = vadd.f32 %v939_v53, %v814_v2 }
 0x10a   : > { %v1990_v62 = vpop.f32.mrf.mxu0  ;;  %v1041_v0 = vpop.f32.mrf.mxu1 }
 0x10b   : > { %1089 = vst.msk [vmem:[#allocation2 + $0x8] sm:$0xff] %vm1087_vm1, %v1048_v61  ;;  %v1042_v4 = vadd.f32 %v1041_v0, %v928_v60  ;;  %v958_v21 = vadd.f32 %v1990_v62, %v838_v10 }
 0x10c   : > { %v951_v5 = vpop.f32.mrf.mxu0  ;;  %v2001_v8 = vpop.f32.mrf.mxu1 }
 0x10d   : > { %1088 = vst.msk [vmem:[#allocation2] sm:$0xff] %vm1087_vm1, %v1042_v4  ;;  %v1060_v13 = vadd.f32 %v2001_v8, %v946_v3  ;;  %v952_v16 = vadd.f32 %v951_v5, %v830_v20 }
 0x10e   : > { %v1993_v17 = vpop.f32.mrf.mxu0  ;;  %v1053_v14 = vpop.f32.mrf.mxu1 }
 0x10f   : > { %1091 = vst.msk [vmem:[#allocation2 + $0x18] sm:$0xff] %vm1087_vm1, %v1060_v13  ;;  %v1054_v23 = vadd.f32 %v1053_v14, %v940_v12  ;;  %v970_v30 = vadd.f32 %v1993_v17, %v854_v11 }
 0x110   : > { %v2004_v25 = vpop.f32.mrf.mxu1  ;;  %v963_v24 = vpop.f32.mrf.mxu0 }
 0x111   : > { %1090 = vst.msk [vmem:[#allocation2 + $0x10] sm:$0xff] %vm1087_vm1, %v1054_v23  ;;  %v1072_v22 = vadd.f32 %v2004_v25, %v958_v21  ;;  %v964_v32 = vadd.f32 %v963_v24, %v846_v28 }
 0x112   : > { %v1065_v18 = vpop.f32.mrf.mxu1 }
 0x113   : > { %1093 = vst.msk [vmem:[#allocation2 + $0x28] sm:$0xff] %vm1087_vm1, %v1072_v22  ;;  %v1066_v27 = vadd.f32 %v1065_v18, %v952_v16 }
 0x114   : > { %v2007_v31 = vpop.f32.mrf.mxu1 }
 0x115   : > { %1092 = vst.msk [vmem:[#allocation2 + $0x20] sm:$0xff] %vm1087_vm1, %v1066_v27  ;;  %v1084_v29 = vadd.f32 %v2007_v31, %v970_v30 }
 0x116   : > { %v1077_v35 = vpop.f32.mrf.mxu1 }
 0x117   : > { %1095 = vst.msk [vmem:[#allocation2 + $0x38] sm:$0xff] %vm1087_vm1, %v1084_v29  ;;  %v1078_v36 = vadd.f32 %v1077_v35, %v964_v32 }
 0x119   : > { %1094 = vst.msk [vmem:[#allocation2 + $0x30] sm:$0xff] %vm1087_vm1, %v1078_v36 }
 0x11a LB: >> { %v1147_v39 = vand.u32 4294901760, %v2468_v34  ;;  %v2283_v40 = vmov 0.0   ;;  %v1150_v41 = vand.u32 4294901760, %v2466_v33  ;;  %s2284_s16 = smov 80   ;;  %vm2285_vm2 = vmmov 0   ;;  %p1106_p11 = scmp.eq.s32.totalorder %s2352_s25, 0  ;;  %s2281_s28 = sphi %s2563_s28, %s1103_s28   ;;  %v2277_v38 = vphi %v2561_v38, %v2725_v38   ;;  %v2273_v37 = vphi %v2559_v37, %v2724_v37  }
 0x11b   : >> { %2015 = vmatprep.subr.mxu1 %v2283_v40  ;;  %2008 = vmatprep.subr.mxu0 %v2283_v40  ;;  %vm1115_vm3 = vcmask 130048   ;;  %s1107_s17 = ssub.s32 7, %s2281_s28  ;;  %s2286_s12 = smov 96  }
 0x11c   : >> { %1113 = vrot.lane.b32.xlu0 %v2277_v38, %s2284_s16  ;;  %v1225_v42 = vsub.f32 %v2468_v34, %v1147_v39  ;;  %2019 = vmatprep.mubr.msk.f32.mxu1 %vm2285_vm2, %v2283_v40  ;;  %v1232_v43 = vsub.f32 %v2466_v33, %v1150_v41  ;;  %s2587_s29 = scalar_select %p1106_p11, %s2281_s28, %s1107_s17 }
 0x11d   : >> { %2009 = vmatpush3.msra.mxu0 %v1147_v39  ;;  %2012 = vmatprep.mubr.msk.f32.mxu0 %vm2285_vm2, %v2283_v40  ;;  %s2287_s14 = smov 16   ;;  %s2288_s15 = smov 32  }
 0x11e   : >> { %v1226_v44 = vand.u32 4294901760, %v1225_v42  ;;  %2010 = vmatprep.subr.mxu0 %v2283_v40  ;;  %v1233_v45 = vand.u32 4294901760, %v1232_v43  ;;  %s1839_s10 = sshll.u32 %s2587_s29, 3  ;;  %s1103_s28 = sadd.s32 1, %s2281_s28  }
 0x11f   : >> { %2011 = vmatpush3.msra.mxu0 %v1150_v41  ;;  %s1110_s11 = scalar_lea.vmem [#allocation2], %s1839_s10  ;;  %s1606_s18 = scalar_lea.vmem %s2549_s13, %s1839_s10 [#allocation3] }
 0x120   : >> { %v1227_v46 = vsub.f32 %v1225_v42, %v1226_v44  ;;  %2022 = vmatprep.subr.mxu0 %v2283_v40  ;;  %v1234_v47 = vsub.f32 %v1232_v43, %v1233_v45  ;;  %v1111_v8 = vld [vmem:[%s1110_s11] sm:$0xff]  ;;  %p1100_p12 = scmp.ge.s32.totalorder %s1103_s28, 8  }
 0x121   : > { %s2289_s17 = smov (%p1100_p12), 80   ;;  %s1851_s29 = sshll.u32 (%p1100_p12), %s2352_s25, 10 }
 0x122   : >> { %v1228_v48 = vand.u32 4294901760, %v1227_v46  ;;  %v1235_v49 = vand.u32 4294901760, %v1234_v47  ;;  %s1643_s10 = sshll.u32 (%p1100_p12), %s2549_s13, 4  ;;  %s1620_s28 = scalar_lea.sflag (%p1100_p12), [#allocation4], %s2382_s9  ;;  %s2612_s10 = int_to_ptr.vmem [resolvable:$true] %s1643_s10 }
 0x124   : >> { %2016 = vmatpush3.msra.mxu1 %v1228_v48 }
 0x125   : >> { %2017 = vmatprep.subr.mxu1 %v2283_v40 }
 0x126   : >> { %2018 = vmatpush3.msra.mxu1 %v1235_v49 }
 0x127   : >> { %2029 = vmatprep.subr.mxu1 %v2283_v40 }
 0x18e   : >> { %v1114_v50 = vpop.permute.xlu0 %1113 }
 0x18f   : >> { %v1116_v51 = vsel %vm1115_vm3, %v1114_v50, 0 }
 0x190   : >> { %v1185_v52 = vand.u32 4294901760, %v1116_v51 }
 0x192   : >> { %v1186_v53 = vsub.f32 %v1116_v51, %v1185_v52  ;;  %2020 = vmatmul.mubr.f32.vlgmr.msra.gmra.mxu1 %v1185_v52 }
 0x193   : >> { %2030 = vmatpush3.msra.mxu1 %v1147_v39  ;;  %2033 = vmatprep.mubr.msk.f32.mxu1 %vm2285_vm2, %v2283_v40 }
 0x194   : >> { %v1187_v54 = vand.u32 4294901760, %v1186_v53  ;;  %2031 = vmatprep.subr.mxu1 %v2283_v40 }
 0x195   : >> { %2032 = vmatpush3.msra.mxu1 %v1150_v41 }
 0x196   : >> { %2034 = vmatmul.mubr.f32.vlgmr.msra.gmra.mxu1 %v1187_v54  ;;  %2043 = vmatprep.subr.mxu1 %v2283_v40  ;;  %v1188_v55 = vsub.f32 %v1186_v53, %v1187_v54 }
 0x197   : >> { %2044 = vmatpush3.msra.mxu1 %v1147_v39  ;;  %2047 = vmatprep.mubr.msk.f32.mxu1 %vm2285_vm2, %v2283_v40 }
 0x198   : >> { %2045 = vmatprep.subr.mxu1 %v2283_v40  ;;  %v1189_v56 = vand.u32 4294901760, %v1188_v55 }
 0x199   : >> { %2046 = vmatpush3.msra.mxu1 %v1150_v41 }
 0x19a   : >> { %2013 = vmatmul.mubr.f32.vlgmr.msra.gmra.mxu0 %v1189_v56  ;;  %2048 = vmatmul.mubr.f32.vlgmr.msra.gmra.mxu1 %v1185_v52 }
 0x19b   : >> { %2023 = vmatpush3.msra.mxu0 %v1225_v42  ;;  %2026 = vmatprep.mubr.msk.f32.mxu0 %vm2285_vm2, %v2283_v40 }
 0x19c   : >> { %2024 = vmatprep.subr.mxu0 %v2283_v40 }
 0x19d   : >> { %2025 = vmatpush3.msra.mxu0 %v1232_v43 }
 0x19e   : >> { %2036 = vmatprep.subr.mxu0 %v2283_v40  ;;  %2027 = vmatmul.mubr.f32.vlgmr.msra.gmra.mxu0 %v1186_v53 }
 0x19f   : >> { %2037 = vmatpush3.msra.mxu0 %v1226_v44  ;;  %2040 = vmatprep.mubr.msk.f32.mxu0 %vm2285_vm2, %v2283_v40 }
 0x1a0   : >> { %2038 = vmatprep.subr.mxu0 %v2283_v40 }
 0x1a1   : >> { %2039 = vmatpush3.msra.mxu0 %v1233_v45 }
 0x1a2   : >> { %2041 = vmatmul.mubr.f32.vlgmr.msra.gmra.mxu0 %v1185_v52 }
 0x252   : >> { %v1272_v57 = vpop.f32.mrf.mxu1 }
 0x254   : >> { %v2021_v58 = vpop.f32.mrf.mxu1 }
 0x256   : >> { %v1423_v59 = vpop.f32.mrf.mxu1 }
 0x258   : >> { %v2035_v60 = vpop.f32.mrf.mxu1 }
 0x25a   : >> { %v1191_v61 = vpop.f32.mrf.mxu0  ;;  %v1573_v62 = vpop.f32.mrf.mxu1 }
 0x25b   : >> { %v1273_v1 = vadd.f32 %v1272_v57, %v1191_v61 }
 0x25c   : >> { %v2014_v63 = vpop.f32.mrf.mxu0  ;;  %v2049_v0 = vpop.f32.mrf.mxu1 }
 0x25e   : >> { %v1348_v2 = vpop.f32.mrf.mxu0 }
 0x25f   : >> { %v1349_v3 = vadd.f32 %v1348_v2, %v1273_v1 }
 0x260   : >> { %v2028_v4 = vpop.f32.mrf.mxu0 }
 0x261   : >> { %v1424_v5 = vadd.f32 %v1423_v59, %v1349_v3 }
 0x262   : >> { %v1500_v6 = vpop.f32.mrf.mxu0 }
 0x263   : >> { %v1501_v7 = vadd.f32 %v1500_v6, %v1424_v5 }
 0x264   : >> { %v2042_v9 = vpop.f32.mrf.mxu0 }
 0x265   : >> { %v1574_v10 = vadd.f32 %v1573_v62, %v1501_v7 }
 0x267   : >> { %v1577_v12 = vadd.f32 %v1574_v10, %v1111_v8 }
 0x269   : >> { %2133 = vtanh.f32 %v1577_v12  ;;  %v1840_v15 = vmul.f32 -1.442695, %v1577_v12 }
 0x26b   : >> { %2135 = vpow2.f32 %v1840_v15 }
 0x276   : >> { %v2134_v13 = vpop.eup %2133 }
 0x277   : >> { %1587 = vrot.lane.b32.xlu0 %v2134_v13, %s2286_s12 }
 0x278   : >> { %v2136_v17 = vpop.eup %2135 }
 0x279   : >> { %v1581_v14 = vadd.f32 1.0, %v2136_v17 }
 0x27b   : >> { %2137 = vrcp.f32 %v1581_v14 }
 0x288   : >> { %v2138_v19 = vpop.eup %2137 }
 0x289   : >> { %v1585_v23 = vmul.f32 %v2273_v37, %v2138_v19 }
 0x2e9   : >> { %v1588_v20 = vpop.permute.xlu0 %1587 }
 0x2ea   : >> { %v1590_v21 = vmul.f32 %v2138_v19, %v1588_v20 }
 0x2ec   : >> { %1592 = vrot.lane.b32.xlu1 %v1590_v21, %s2287_s14  ;;  %s2610_s14 = scalar_lea.hbm (%p1100_p12), %s2718_s4, %s1851_s29 }
 0x35e   : >> { %v1593_v25 = vpop.permute.xlu1 %1592 }
 0x35f   : >> { %v1595_v26 = vadd.f32 %v1593_v25, %v1585_v23  }
 0x361   : >> { %2139 = vtanh.f32 %v1595_v26  ;;  %v2724_v37 = vmov %v1595_v26 }
 0x36e   : >> { %v2140_v11 = vpop.eup %2139 }
 0x36f   : >> { %1598 = vrot.lane.b32.xlu1 %v2140_v11, %s2288_s15  ;;  %s2141_s15 = scalar_lea.vmem (%p1100_p12), %s2612_s10, 1024 }
 0x370   : > { %p2142_p13 = scmp.ne.s32.totalorder (%p1100_p12), %s2612_s10, %s2141_s15 }
 0x372   : > { %p2143_p0 = pnand (%p1100_p12), %p2142_p13, %p2371_p5 }
 0x374   : > { %p2144_p1 = pneg (%p1100_p12), %p2143_p0 }
 0x3e1   : >> { %v1599_v16 = vpop.permute.xlu1 %1598 }
 0x3e2   : >> { %v1601_v22 = vmul.f32 %v2138_v19, %v1599_v16  }
 0x3e4   : >> { %1603 = vrot.lane.b32.xlu0 %v1601_v22, %s2284_s16  ;;  %v2725_v38 = vmov %v1601_v22  ;;  %s2290_s16 = smov (%p1100_p12), 112  }
 0x3e8   : > { %1609 = vrot.lane.b32.xlu0 (%p1100_p12), %v1601_v22, %s2289_s17 }
 0x3ec   : > { %1615 = vrot.lane.b32.xlu0 (%p1100_p12), %v1595_v26, %s2290_s16 }
 0x453   : > { %1102 = sbr.rel (!%p1100_p12) target bundleno = 282 (0x11a), region = 118 }
 0x456   : >> { %v1604_v24 = vpop.permute.xlu0 %1603 }
 0x457   : >> { %1607 = vst.msk [vmem:[%s1606_s18] sm:$0xff] %vm1115_vm3, %v1604_v24  ;;  %s2291_s18 = smov (%p1100_p12), [#allocation3]  }
 0x458   : > { %s2145_s17 = sshll.u32 %s2291_s18, 4  ;;  %s2146_s17 = int_to_ptr.vmem [resolvable:$false] %s2145_s17 }
 0x459   : > { %s2147_s13 = scalar_lea.vmem %s2146_s17, 2048  ;;  %p2148_p2 = scmp.lt.s32.totalorder %s2612_s10, %s2146_s17 }
 0x45a   : > { %p2149_p3 = scmp.lt.s32.totalorder %s2147_s13, %s2141_s15 }
 0x45c   : > { %p2150_p4 = por %p2149_p3, %p2148_p2 }
 0x45e   : > { %p2151_p7 = pnand %p2150_p4, %p2144_p1 }
 0x460   : > { %2154 = shalt.err (!%p2151_p7)
}
 0x461   : > { %s2155_s16 = scalar_lea.hbm %s2610_s14, 1024  ;;  %s2159_s12 = scalar_lea.hbm %s2718_s4, 2048 }
 0x462   : > { %p2156_p8 = scmp.ne.s32.totalorder %s2610_s14, %s2155_s16  ;;  %p2160_p11 = scmp.lt.s32.totalorder %s2610_s14, %s2718_s4 }
 0x463   : > { %p2161_p12 = scmp.lt.s32.totalorder %s2159_s12, %s2155_s16 }
 0x464   : > { %p2157_p9 = pnand %p2156_p8, %p2371_p5 }
 0x465   : > { %p2162_p13 = por %p2161_p12, %p2160_p11 }
 0x466   : > { %p2158_p10 = pneg %p2157_p9 }
 0x468   : > { %p2163_p0 = pnand %p2162_p13, %p2158_p10 }
 0x46a   : > { %2166 = shalt.err (!%p2163_p0)
}
 0x46b   : > { %s2292_s15 = smov 128   ;;  %s2293_s17 = smov 8   ;;  %v1610_v33 = vpop.permute.xlu0 %1609 }
 0x46c   : > { %2050 = dma.vmem_to_hbm [thread:$0]  (%p2371_p5), %s2612_s10, 1024, %s2610_s14, %s1620_s28, %s2292_s15, %s2292_s15, %s2293_s17  }
 0x46d   : > { %s1624_s26 = sand.u32 1, %s2352_s25   ;;  %s1846_s13 = sshll.u32 %s2352_s25, 7  ;;  %1613 = vst.msk [vmem:[%s2553_s19] sm:$0xff] %vm1115_vm3, %v1610_v33 }
 0x46e   : > { %s1659_s16 = sshll.u32 %s2553_s19, 4  ;;  %s2645_s12 = scalar_lea.hbm %s2719_s5, %s1846_s13  ;;  %s2647_s16 = int_to_ptr.vmem [resolvable:$true] %s1659_s16 }
 0x46f   : > { %s1672_s18 = sshll.u32 %s2557_s20, 4  ;;  %s2652_s9 = scalar_lea.sflag [#allocation6], %s1624_s26  ;;  %s1673_s18 = int_to_ptr.vmem [resolvable:$true] %s1672_s18 }
 0x470   : > { %s2167_s10 = scalar_lea.vmem %s2647_s16, 128  ;;  %s2294_s14 = smov [#allocation5]  }
 0x471   : > { %p2168_p1 = scmp.ne.s32.totalorder %s2647_s16, %s2167_s10  ;;  %s2171_s28 = sshll.u32 %s2294_s14, 4  ;;  %s2172_s28 = int_to_ptr.vmem [resolvable:$false] %s2171_s28 }
 0x472   : > { %s2173_s15 = scalar_lea.vmem %s2172_s28, 256  ;;  %p2174_p4 = scmp.lt.s32.totalorder %s2647_s16, %s2172_s28 }
 0x473   : > { %p2169_p2 = pnand %p2168_p1, %p2371_p5  ;;  %p2175_p7 = scmp.lt.s32.totalorder %s2173_s15, %s2167_s10 }
 0x475   : > { %p2170_p3 = pneg %p2169_p2  ;;  %p2176_p8 = por %p2175_p7, %p2174_p4 }
 0x477   : > { %p2177_p9 = pnand %p2176_p8, %p2170_p3 }
 0x479   : > { %2180 = shalt.err (!%p2177_p9)
}
 0x47a   : > { %s2181_s19 = scalar_lea.hbm %s2645_s12, 128  ;;  %s2185_s29 = scalar_lea.hbm %s2719_s5, 256 }
 0x47b   : > { %p2182_p10 = scmp.ne.s32.totalorder %s2645_s12, %s2181_s19  ;;  %p2186_p13 = scmp.lt.s32.totalorder %s2645_s12, %s2719_s5 }
 0x47c   : > { %p2187_p0 = scmp.lt.s32.totalorder %s2185_s29, %s2181_s19 }
 0x47d   : > { %p2183_p11 = pnand %p2182_p10, %p2371_p5 }
 0x47e   : > { %p2188_p1 = por %p2187_p0, %p2186_p13 }
 0x47f   : > { %p2184_p12 = pneg %p2183_p11 }
 0x481   : > { %p2189_p2 = pnand %p2188_p1, %p2184_p12 }
 0x483   : > { %2192 = shalt.err (!%p2189_p2)
}
 0x484   : > { %2051 = dma.vmem_to_hbm [thread:$0]  (%p2371_p5), %s2647_s16, 128, %s2645_s12, %s2652_s9   ;;  %v1616_v34 = vpop.permute.xlu0 %1615 }
 0x485   : > { %s1670_s15 = scalar_lea.hbm %s2720_s6, %s1846_s13  ;;  %1618 = vst.msk [vmem:[%s2557_s20] sm:$0xff] %vm1115_vm3, %v1616_v34  ;;  %s2193_s19 = scalar_lea.vmem %s1673_s18, 128 }
 0x486   : > { %p2194_p3 = scmp.ne.s32.totalorder %s1673_s18, %s2193_s19  ;;  %s2295_s17 = smov [#allocation7]  }
 0x487   : > { %s2197_s26 = sshll.u32 %s2295_s17, 4  ;;  %s2198_s26 = int_to_ptr.vmem [resolvable:$false] %s2197_s26 }
 0x488   : > { %p2195_p4 = pnand %p2194_p3, %p2371_p5  ;;  %s2199_s29 = scalar_lea.vmem %s2198_s26, 256 }
 0x489   : > { %p2200_p8 = scmp.lt.s32.totalorder %s1673_s18, %s2198_s26  ;;  %p2201_p9 = scmp.lt.s32.totalorder %s2199_s29, %s2193_s19 }
 0x48a   : > { %p2196_p7 = pneg %p2195_p4 }
 0x48b   : > { %p2202_p10 = por %p2201_p9, %p2200_p8 }
 0x48d   : > { %p2203_p11 = pnand %p2202_p10, %p2196_p7 }
 0x48f   : > { %2206 = shalt.err (!%p2203_p11)
}
 0x490   : > { %s2207_s25 = scalar_lea.hbm %s1670_s15, 128  ;;  %s2211_s16 = scalar_lea.hbm %s2720_s6, 256 }
 0x491   : > { %p2208_p12 = scmp.ne.s32.totalorder %s1670_s15, %s2207_s25  ;;  %p2212_p1 = scmp.lt.s32.totalorder %s1670_s15, %s2720_s6 }
 0x492   : > { %p2213_p2 = scmp.lt.s32.totalorder %s2211_s16, %s2207_s25 }
 0x493   : > { %p2209_p13 = pnand %p2208_p12, %p2371_p5 }
 0x494   : > { %p2214_p3 = por %p2213_p2, %p2212_p1 }
 0x495   : > { %p2210_p0 = pneg %p2209_p13 }
 0x497   : > { %p2215_p4 = pnand %p2214_p3, %p2210_p0 }
 0x499   : > { %2218 = shalt.err (!%p2215_p4)
}
 0x49a   : > { %2052 = dma.vmem_to_hbm [thread:$0]  (%p2371_p5), %s1673_s18, 128, %s1670_s15, %s2652_s9  }
 0x49b PF: > { %p2066_p7 = scmp.ge.s32.totalorder %s2269_s24, 2  ;;  %s1684_s14 = sand.u32 1, %s2257_s21  }
 0x49c   : > { %s1685_s10 = scalar_lea.sflag [#allocation4], %s1684_s14 }
 0x49d   : > { %p2057_p8 = pnand %p2066_p7, %p2375_p6 }
 0x49f   : > { %p2058_p9 = pneg %p2057_p8 }
 0x4a1   : > { %2248 = dma.done.wait (%p2058_p9), %s1685_s10, 1024  }
 0x4a2   : > { %2250 = vsyncadd (%p2058_p9), %s1685_s10, 4294966272  ;;  %s2726_s28 = sadd.s32 4294967294, %s2269_s24  }
 0x4a3   : > { %s1693_s19 = sand.u32 1, %s2726_s28  }
 0x4a4   : > { %s1694_s17 = scalar_lea.sflag [#allocation6], %s1693_s19 }
 0x4a5   : > { %2252 = dma.done.wait (%p2058_p9), %s1694_s17, 256  }
 0x4a6   : > { %2254 = vsyncadd (%p2058_p9), %s1694_s17, 4294967040  ;;  %p20_p5 = scmp.ge.s32.totalorder %s2356_s27, 4   ;;  %s2727_s21 = smov %s2261_s22 }
 0x4a7   : > { %s2728_s22 = smov %s2265_s23  ;;  %s2729_s23 = smov %s2369_s30 }
 0x4a8   : > { %s2730_s24 = smov %s2356_s27  ;;  %22 = sbr.rel (!%p20_p5) target bundleno = 5 (0x5), region = 129 }
 0x4ad   :  { %1708 = vsyncpa [#allocation4], 1 }
 0x4ae   :  { %1710 = vsyncpa [#allocation4 + $0x1], 1 }
 0x4af   :  { %1711 = vsyncpa [#allocation6], 1 }
 0x4b0   :  { %1713 = vsyncpa [#allocation6 + $0x1], 1 }

</bundles_post_ra>
